<compile_context>
chip_gen: v7x
topology: tpu7x:2x2x1
jax: 0.10.0
libtpu: 0.0.40
codegen_flags: <defaults>
</compile_context>

<pallas_src>
import jax
import jax.numpy as jnp
from jax.experimental import pallas as pl
from jax.experimental.pallas import tpu as pltpu

_LANE = 128
_SUBLANE = 8


def _round_up(n, m):
    return ((n + m - 1) // m) * m


def pack_params(params, *, weight_dtype=jnp.float32):
    """Pack w1..w4 / b1..b4 into per-layer lane-dense slabs.

    Weights are stored as [in, out] (transposed vs. PyTorch's [out, in]) so the
    kernel computes x @ W + b on the MXU.  Layer i's slab is
    [rows_i, seg_i] with seg_i = round_up(out_i, 128) and rows_i equal to the
    previous layer's padded width (so activations can be carried at the padded
    width with zero extra columns contributing exactly 0).  Biases are packed
    into one [1, sum(seg_i)] slab with 128-aligned column offsets.
    """
    ws = [params["w1"], params["w2"], params["w3"], params["w4"]]
    bs = [params["b1"], params["b2"], params["b3"], params["b4"]]
    in_f = ws[0].shape[0]
    widths = [w.shape[1] for w in ws]                      # L1, L2, L3, out_features
    segs = [_round_up(n, _LANE) for n in widths]
    row_counts = [in_f, segs[0], segs[1], segs[2]]

    Ws = []
    for w, rows, seg in zip(ws, row_counts, segs):
        wp = jnp.zeros((rows, seg), weight_dtype)
        wp = wp.at[: w.shape[0], : w.shape[1]].set(w.astype(weight_dtype))
        Ws.append(wp)

    total = sum(segs)
    Bv = jnp.zeros((1, total), jnp.float32)
    offsets = []
    off = 0
    for b, seg in zip(bs, segs):
        offsets.append(off)
        Bv = Bv.at[:, off: off + b.shape[-1]].set(
            b.reshape(1, -1).astype(jnp.float32))
        off += seg

    dims = dict(in_features=in_f, segs=tuple(segs), offsets=tuple(offsets),
                out_features=widths[-1])
    return Ws, Bv, dims


def _make_kernel(dims):
    s1, s2, s3, s4 = dims["segs"]
    o1, o2, o3, o4 = dims["offsets"]

    def kernel(x_ref, w1_ref, w2_ref, w3_ref, w4_ref, b_ref, o_ref):
        wdt = w1_ref.dtype  # f32 or bf16 (MXU inputs); accumulation is f32.

        def layer(a, w_ref, off, seg, relu):
            acc = jnp.dot(a.astype(wdt), w_ref[...],
                          preferred_element_type=jnp.float32)
            acc = acc + b_ref[:, off: off + seg]          # lane-aligned slice
            return jnp.maximum(acc, 0.0) if relu else acc

        h = layer(x_ref[...], w1_ref, o1, s1, True)
        h = layer(h, w2_ref, o2, s2, True)
        h = layer(h, w3_ref, o3, s3, True)
        out = layer(h, w4_ref, o4, s4, False)
        # Lane-dense (tile_b, s4) store: unmasked vst.
        o_ref[...] = out.astype(o_ref.dtype)

    return kernel


def mlp_forward(x, params, *, tile_b=None, use_bf16=False):
    """x: [B, input_features] float32.  params: w1..w4 ([in,out]) and b1..b4."""
    B, in_f = x.shape
    wdt = jnp.bfloat16 if use_bf16 else jnp.float32
    Ws, Bv, dims = pack_params(params, weight_dtype=wdt)
    segs = dims["segs"]
    out_features = dims["out_features"]
    out_seg = segs[3]

    weight_bytes = sum(int(w.size) * w.dtype.itemsize for w in Ws) + int(Bv.size) * 4
    # Per-batch-row VMEM bytes: double-buffered x row, f32 intermediates,
    # double-buffered f32 out row.
    per_row = 2 * in_f * x.dtype.itemsize \
        + 4 * (segs[0] + segs[1] + segs[2]) + 2 * 4 * out_seg

    # TODO(synk): if weight_bytes exceeds ~half of VMEM (very wide hidden
    # layers, e.g. ~2048 f32 on v7x), add a K/N-tiled weight-streaming grid
    # (or pltpu.emit_pipeline over weight tiles) instead of requiring all
    # weights resident.

    if tile_b is None:
        budget = (40 << 20) - weight_bytes        # stay well inside v7x's 64 MiB
        cap = min(256, max(_SUBLANE, budget // max(per_row, 1)))
        if B <= cap:
            tile_b = B                             # single step, no batch padding
        else:
            # Prefer an MXU-friendly tile that divides B (no pad round-trip);
            # many moderate grid steps give the auto-pipeline real overlap and
            # let v7x shard the "parallel" batch axis across its 2 TensorCores.
            tile_b = next((c for c in (256, 128, 64, 32, 16, 8)
                           if c <= cap and B % c == 0),
                          max(_SUBLANE, (cap // _SUBLANE) * _SUBLANE))

    grid_b = pl.cdiv(B, tile_b)
    if grid_b > 1 and tile_b % _SUBLANE:
        tile_b = _round_up(tile_b, _SUBLANE)
        grid_b = pl.cdiv(B, tile_b)
    B_pad = grid_b * tile_b
    # Pad the batch only as a last resort (tail rows are sliced off below).
    x_p = x if B_pad == B else jnp.pad(x, ((0, B_pad - B), (0, 0)))

    footprint = weight_bytes + tile_b * per_row
    vmem_limit = int(min(64 << 20, max(2 * footprint, 16 << 20)))

    kernel = _make_kernel(dims)

    def run(single_buffer):
        # Grid-invariant blocks: nothing to prefetch, so single-buffer them
        # (halves the weight VMEM footprint).
        ck = dict(pipeline_mode=pl.Buffered(1)) if single_buffer else {}
        const = lambda a: pl.BlockSpec(a.shape, lambda i: (0, 0), **ck)
        return pl.pallas_call(
            kernel,
            out_shape=jax.ShapeDtypeStruct((B_pad, out_seg), x.dtype),
            grid_spec=pl.GridSpec(
                grid=(grid_b,),
                in_specs=[pl.BlockSpec((tile_b, in_f), lambda i: (i, 0))]
                         + [const(w) for w in Ws] + [const(Bv)],
                out_specs=pl.BlockSpec((tile_b, out_seg), lambda i: (i, 0)),
            ),
            compiler_params=pltpu.CompilerParams(
                dimension_semantics=("parallel",),
                vmem_limit_bytes=vmem_limit),
        )(x_p, *Ws, Bv)

    try:
        out = run(True)
    except Exception:   # fallback if this jax build lacks pipeline_mode support
        out = run(False)

    # Strip batch padding and the lane padding on the final layer.
    return out[:B, :out_features]


def init_params(key, input_features, L1, L2, L3, output_features):
    """Deterministic synthetic init (PyTorch-like uniform fan_in scaling)."""
    layer_dims = [(input_features, L1), (L1, L2), (L2, L3), (L3, output_features)]
    params = {}
    for idx, (fan_in, fan_out) in enumerate(layer_dims, start=1):
        key, kw, kb = jax.random.split(key, 3)
        bound = 1.0 / jnp.sqrt(jnp.float32(fan_in))
        params[f"w{idx}"] = jax.random.uniform(
            kw, (fan_in, fan_out), jnp.float32, -bound, bound)
        params[f"b{idx}"] = jax.random.uniform(
            kb, (1, fan_out), jnp.float32, -bound, bound)
    return params


def mlp_reference(x, p):
    h = jnp.maximum(x @ p["w1"] + p["b1"], 0.0)
    h = jnp.maximum(h @ p["w2"] + p["b2"], 0.0)
    h = jnp.maximum(h @ p["w3"] + p["b3"], 0.0)
    return h @ p["w4"] + p["b4"]


if __name__ == "__main__":
    key = jax.random.PRNGKey(0)
    B = 8
    input_features, L1, L2, L3, output_features = 32, 64, 64, 32, 16

    key, kx = jax.random.split(key)
    x = jax.random.normal(kx, (B, input_features), jnp.float32)
    params = init_params(key, input_features, L1, L2, L3, output_features)

    out = jax.block_until_ready(mlp_forward(x, params))
    ref = mlp_reference(x, params)
    assert out.shape == (B, output_features)
    assert jnp.allclose(out, ref, atol=1e-5, rtol=1e-5)

    # Ragged batch, single full-extent block (no padding copy of x).
    key, kx2 = jax.random.split(key)
    B2 = 20
    x2 = jax.random.normal(kx2, (B2, input_features), jnp.float32)
    ref2 = mlp_reference(x2, params)
    out2 = jax.block_until_ready(mlp_forward(x2, params))
    assert out2.shape == (B2, output_features)
    assert jnp.allclose(out2, ref2, atol=1e-5, rtol=1e-5)

    # Multi-step batch grid with a padded tail (tile does not divide B).
    out3 = jax.block_until_ready(mlp_forward(x2, params, tile_b=8))
    assert jnp.allclose(out3, ref2, atol=1e-5, rtol=1e-5)

    # bf16-weight MXU path (f32 accumulation); looser tolerance vs f32 reference.
    out4 = jax.block_until_ready(mlp_forward(x2, params, use_bf16=True))
    assert out4.shape == (B2, output_features)
    assert jnp.allclose(out4, ref2, atol=1e-1, rtol=1e-1)

    print("KERNEL_OK")
</pallas_src>

<mosaic_0001>
module attributes {stable_mosaic.version = 11 : i64} {
  func.func @kernel(%arg0: i32, %arg1: memref<8x32xf32, #tpu.memory_space<vmem>>, %arg2: memref<32x128xf32, #tpu.memory_space<vmem>>, %arg3: memref<128x128xf32, #tpu.memory_space<vmem>>, %arg4: memref<128x128xf32, #tpu.memory_space<vmem>>, %arg5: memref<128x128xf32, #tpu.memory_space<vmem>>, %arg6: memref<1x512xf32, #tpu.memory_space<vmem>>, %arg7: memref<8x128xf32, #tpu.memory_space<vmem>>) attributes {dimension_semantics = [#tpu.dimension_semantics<parallel>], iteration_bounds = array<i64: 1>, scalar_prefetch = 0 : i64, scratch_operands = 0 : i64, tpu.core_type = #tpu.core_type<tc>, window_params = [{transform_indices = @transform_0, window_bounds = array<i64: 8, 32>}, {pipeline_mode = #tpu.pipeline_mode<synchronous>, transform_indices = @transform_1, window_bounds = array<i64: 32, 128>}, {pipeline_mode = #tpu.pipeline_mode<synchronous>, transform_indices = @transform_2, window_bounds = array<i64: 128, 128>}, {pipeline_mode = #tpu.pipeline_mode<synchronous>, transform_indices = @transform_3, window_bounds = array<i64: 128, 128>}, {pipeline_mode = #tpu.pipeline_mode<synchronous>, transform_indices = @transform_4, window_bounds = array<i64: 128, 128>}, {pipeline_mode = #tpu.pipeline_mode<synchronous>, transform_indices = @transform_5, window_bounds = array<i64: 1, 512>}, {transform_indices = @transform_6, window_bounds = array<i64: 8, 128>}]} {
    %c0 = arith.constant 0 : index
    %c0_0 = arith.constant 0 : index
    %0 = vector.load %arg1[%c0, %c0_0] : memref<8x32xf32, #tpu.memory_space<vmem>>, vector<8x32xf32>
    %c0_1 = arith.constant 0 : index
    %c0_2 = arith.constant 0 : index
    %1 = vector.load %arg2[%c0_1, %c0_2] : memref<32x128xf32, #tpu.memory_space<vmem>>, vector<32x128xf32>
    %cst = arith.constant dense<0.000000e+00> : vector<8x128xf32>
    %2 = tpu.matmul %0, %1, %cst {dimension_numbers = #tpu.dot_dimension_numbers<[1], [0], [0], [1], [0, 0, 1, 1], [], []>} : vector<8x32xf32>, vector<32x128xf32>, vector<8x128xf32> -> vector<8x128xf32>
    %c0_3 = arith.constant 0 : index
    %c0_4 = arith.constant 0 : index
    %3 = vector.load %arg6[%c0_3, %c0_4] : memref<1x512xf32, #tpu.memory_space<vmem>>, vector<1x128xf32>
    %4 = vector.broadcast %3 : vector<1x128xf32> to vector<8x128xf32>
    %5 = arith.addf %2, %4 : vector<8x128xf32>
    %cst_5 = arith.constant 0.000000e+00 : f32
    %6 = vector.broadcast %cst_5 : f32 to vector<8x128xf32>
    %7 = arith.maximumf %5, %6 : vector<8x128xf32>
    %c0_6 = arith.constant 0 : index
    %c0_7 = arith.constant 0 : index
    %8 = vector.load %arg3[%c0_6, %c0_7] : memref<128x128xf32, #tpu.memory_space<vmem>>, vector<128x128xf32>
    %cst_8 = arith.constant dense<0.000000e+00> : vector<8x128xf32>
    %9 = tpu.matmul %7, %8, %cst_8 {dimension_numbers = #tpu.dot_dimension_numbers<[1], [0], [0], [1], [0, 0, 1, 1], [], []>} : vector<8x128xf32>, vector<128x128xf32>, vector<8x128xf32> -> vector<8x128xf32>
    %c0_9 = arith.constant 0 : index
    %c128 = arith.constant 128 : index
    %10 = vector.load %arg6[%c0_9, %c128] : memref<1x512xf32, #tpu.memory_space<vmem>>, vector<1x128xf32>
    %11 = vector.broadcast %10 : vector<1x128xf32> to vector<8x128xf32>
    %12 = arith.addf %9, %11 : vector<8x128xf32>
    %cst_10 = arith.constant 0.000000e+00 : f32
    %13 = vector.broadcast %cst_10 : f32 to vector<8x128xf32>
    %14 = arith.maximumf %12, %13 : vector<8x128xf32>
    %c0_11 = arith.constant 0 : index
    %c0_12 = arith.constant 0 : index
    %15 = vector.load %arg4[%c0_11, %c0_12] : memref<128x128xf32, #tpu.memory_space<vmem>>, vector<128x128xf32>
    %cst_13 = arith.constant dense<0.000000e+00> : vector<8x128xf32>
    %16 = tpu.matmul %14, %15, %cst_13 {dimension_numbers = #tpu.dot_dimension_numbers<[1], [0], [0], [1], [0, 0, 1, 1], [], []>} : vector<8x128xf32>, vector<128x128xf32>, vector<8x128xf32> -> vector<8x128xf32>
    %c0_14 = arith.constant 0 : index
    %c256 = arith.constant 256 : index
    %17 = vector.load %arg6[%c0_14, %c256] : memref<1x512xf32, #tpu.memory_space<vmem>>, vector<1x128xf32>
    %18 = vector.broadcast %17 : vector<1x128xf32> to vector<8x128xf32>
    %19 = arith.addf %16, %18 : vector<8x128xf32>
    %cst_15 = arith.constant 0.000000e+00 : f32
    %20 = vector.broadcast %cst_15 : f32 to vector<8x128xf32>
    %21 = arith.maximumf %19, %20 : vector<8x128xf32>
    %c0_16 = arith.constant 0 : index
    %c0_17 = arith.constant 0 : index
    %22 = vector.load %arg5[%c0_16, %c0_17] : memref<128x128xf32, #tpu.memory_space<vmem>>, vector<128x128xf32>
    %cst_18 = arith.constant dense<0.000000e+00> : vector<8x128xf32>
    %23 = tpu.matmul %21, %22, %cst_18 {dimension_numbers = #tpu.dot_dimension_numbers<[1], [0], [0], [1], [0, 0, 1, 1], [], []>} : vector<8x128xf32>, vector<128x128xf32>, vector<8x128xf32> -> vector<8x128xf32>
    %c0_19 = arith.constant 0 : index
    %c384 = arith.constant 384 : index
    %24 = vector.load %arg6[%c0_19, %c384] : memref<1x512xf32, #tpu.memory_space<vmem>>, vector<1x128xf32>
    %25 = vector.broadcast %24 : vector<1x128xf32> to vector<8x128xf32>
    %26 = arith.addf %23, %25 : vector<8x128xf32>
    %c0_20 = arith.constant 0 : index
    %c0_21 = arith.constant 0 : index
    %27 = vector.load %arg7[%c0_20, %c0_21] : memref<8x128xf32, #tpu.memory_space<vmem>>, vector<8x128xf32>
    tpu.vector_store %arg7[%c0_20, %c0_21], %26 {strides = array<i32>} : memref<8x128xf32, #tpu.memory_space<vmem>>, vector<8x128xf32>,
    return
  }
  func.func @transform_0(%arg0: i32) -> (i32, i32) {
    %c0_i32 = arith.constant 0 : i32
    %c0_i32_0 = arith.constant 0 : i32
    return %arg0, %c0_i32 : i32, i32
  }
  func.func @transform_1(%arg0: i32) -> (i32, i32) {
    %c0_i32 = arith.constant 0 : i32
    %c0_i32_0 = arith.constant 0 : i32
    %c0_i32_1 = arith.constant 0 : i32
    return %c0_i32, %c0_i32_0 : i32, i32
  }
  func.func @transform_2(%arg0: i32) -> (i32, i32) {
    %c0_i32 = arith.constant 0 : i32
    %c0_i32_0 = arith.constant 0 : i32
    %c0_i32_1 = arith.constant 0 : i32
    return %c0_i32, %c0_i32_0 : i32, i32
  }
  func.func @transform_3(%arg0: i32) -> (i32, i32) {
    %c0_i32 = arith.constant 0 : i32
    %c0_i32_0 = arith.constant 0 : i32
    %c0_i32_1 = arith.constant 0 : i32
    return %c0_i32, %c0_i32_0 : i32, i32
  }
  func.func @transform_4(%arg0: i32) -> (i32, i32) {
    %c0_i32 = arith.constant 0 : i32
    %c0_i32_0 = arith.constant 0 : i32
    %c0_i32_1 = arith.constant 0 : i32
    return %c0_i32, %c0_i32_0 : i32, i32
  }
  func.func @transform_5(%arg0: i32) -> (i32, i32) {
    %c0_i32 = arith.constant 0 : i32
    %c0_i32_0 = arith.constant 0 : i32
    %c0_i32_1 = arith.constant 0 : i32
    return %c0_i32, %c0_i32_0 : i32, i32
  }
  func.func @transform_6(%arg0: i32) -> (i32, i32) {
    %c0_i32 = arith.constant 0 : i32
    %c0_i32_0 = arith.constant 0 : i32
    return %arg0, %c0_i32 : i32, i32
  }
}

module attributes {stable_mosaic.version = 11 : i64} {
  func.func @kernel(%arg0: i32, %arg1: memref<8x32xf32, #tpu.memory_space<vmem>>, %arg2: memref<32x128xf32, #tpu.memory_space<vmem>>, %arg3: memref<128x128xf32, #tpu.memory_space<vmem>>, %arg4: memref<128x128xf32, #tpu.memory_space<vmem>>, %arg5: memref<128x128xf32, #tpu.memory_space<vmem>>, %arg6: memref<1x512xf32, #tpu.memory_space<vmem>>, %arg7: memref<8x128xf32, #tpu.memory_space<vmem>>) attributes {dimension_semantics = [#tpu.dimension_semantics<parallel>], iteration_bounds = array<i64: 1>, scalar_prefetch = 0 : i64, scratch_operands = 0 : i64, tpu.core_type = #tpu.core_type<tc>, window_params = [{transform_indices = @transform_0, window_bounds = array<i64: 8, 32>}, {pipeline_mode = #tpu.pipeline_mode<synchronous>, transform_indices = @transform_1, window_bounds = array<i64: 32, 128>}, {pipeline_mode = #tpu.pipeline_mode<synchronous>, transform_indices = @transform_2, window_bounds = array<i64: 128, 128>}, {pipeline_mode = #tpu.pipeline_mode<synchronous>, transform_indices = @transform_3, window_bounds = array<i64: 128, 128>}, {pipeline_mode = #tpu.pipeline_mode<synchronous>, transform_indices = @transform_4, window_bounds = array<i64: 128, 128>}, {pipeline_mode = #tpu.pipeline_mode<synchronous>, transform_indices = @transform_5, window_bounds = array<i64: 1, 512>}, {transform_indices = @transform_6, window_bounds = array<i64: 8, 128>}]} {
    %c0 = arith.constant 0 : index
    %c0_0 = arith.constant 0 : index
    %0 = vector.load %arg1[%c0, %c0_0] : memref<8x32xf32, #tpu.memory_space<vmem>>, vector<8x32xf32>
    %c0_1 = arith.constant 0 : index
    %c0_2 = arith.constant 0 : index
    %1 = vector.load %arg2[%c0_1, %c0_2] : memref<32x128xf32, #tpu.memory_space<vmem>>, vector<32x128xf32>
    %cst = arith.constant dense<0.000000e+00> : vector<8x128xf32>
    %2 = tpu.matmul %0, %1, %cst {dimension_numbers = #tpu.dot_dimension_numbers<[1], [0], [0], [1], [0, 0, 1, 1], [], []>} : vector<8x32xf32>, vector<32x128xf32>, vector<8x128xf32> -> vector<8x128xf32>
    %c0_3 = arith.constant 0 : index
    %c0_4 = arith.constant 0 : index
    %3 = vector.load %arg6[%c0_3, %c0_4] : memref<1x512xf32, #tpu.memory_space<vmem>>, vector<1x128xf32>
    %4 = vector.broadcast %3 : vector<1x128xf32> to vector<8x128xf32>
    %5 = arith.addf %2, %4 : vector<8x128xf32>
    %cst_5 = arith.constant 0.000000e+00 : f32
    %6 = vector.broadcast %cst_5 : f32 to vector<8x128xf32>
    %7 = arith.maximumf %5, %6 : vector<8x128xf32>
    %c0_6 = arith.constant 0 : index
    %c0_7 = arith.constant 0 : index
    %8 = vector.load %arg3[%c0_6, %c0_7] : memref<128x128xf32, #tpu.memory_space<vmem>>, vector<128x128xf32>
    %cst_8 = arith.constant dense<0.000000e+00> : vector<8x128xf32>
    %9 = tpu.matmul %7, %8, %cst_8 {dimension_numbers = #tpu.dot_dimension_numbers<[1], [0], [0], [1], [0, 0, 1, 1], [], []>} : vector<8x128xf32>, vector<128x128xf32>, vector<8x128xf32> -> vector<8x128xf32>
    %c0_9 = arith.constant 0 : index
    %c128 = arith.constant 128 : index
    %10 = vector.load %arg6[%c0_9, %c128] : memref<1x512xf32, #tpu.memory_space<vmem>>, vector<1x128xf32>
    %11 = vector.broadcast %10 : vector<1x128xf32> to vector<8x128xf32>
    %12 = arith.addf %9, %11 : vector<8x128xf32>
    %cst_10 = arith.constant 0.000000e+00 : f32
    %13 = vector.broadcast %cst_10 : f32 to vector<8x128xf32>
    %14 = arith.maximumf %12, %13 : vector<8x128xf32>
    %c0_11 = arith.constant 0 : index
    %c0_12 = arith.constant 0 : index
    %15 = vector.load %arg4[%c0_11, %c0_12] : memref<128x128xf32, #tpu.memory_space<vmem>>, vector<128x128xf32>
    %cst_13 = arith.constant dense<0.000000e+00> : vector<8x128xf32>
    %16 = tpu.matmul %14, %15, %cst_13 {dimension_numbers = #tpu.dot_dimension_numbers<[1], [0], [0], [1], [0, 0, 1, 1], [], []>} : vector<8x128xf32>, vector<128x128xf32>, vector<8x128xf32> -> vector<8x128xf32>
    %c0_14 = arith.constant 0 : index
    %c256 = arith.constant 256 : index
    %17 = vector.load %arg6[%c0_14, %c256] : memref<1x512xf32, #tpu.memory_space<vmem>>, vector<1x128xf32>
    %18 = vector.broadcast %17 : vector<1x128xf32> to vector<8x128xf32>
    %19 = arith.addf %16, %18 : vector<8x128xf32>
    %cst_15 = arith.constant 0.000000e+00 : f32
    %20 = vector.broadcast %cst_15 : f32 to vector<8x128xf32>
    %21 = arith.maximumf %19, %20 : vector<8x128xf32>
    %c0_16 = arith.constant 0 : index
    %c0_17 = arith.constant 0 : index
    %22 = vector.load %arg5[%c0_16, %c0_17] : memref<128x128xf32, #tpu.memory_space<vmem>>, vector<128x128xf32>
    %cst_18 = arith.constant dense<0.000000e+00> : vector<8x128xf32>
    %23 = tpu.matmul %21, %22, %cst_18 {dimension_numbers = #tpu.dot_dimension_numbers<[1], [0], [0], [1], [0, 0, 1, 1], [], []>} : vector<8x128xf32>, vector<128x128xf32>, vector<8x128xf32> -> vector<8x128xf32>
    %c0_19 = arith.constant 0 : index
    %c384 = arith.constant 384 : index
    %24 = vector.load %arg6[%c0_19, %c384] : memref<1x512xf32, #tpu.memory_space<vmem>>, vector<1x128xf32>
    %25 = vector.broadcast %24 : vector<1x128xf32> to vector<8x128xf32>
    %26 = arith.addf %23, %25 : vector<8x128xf32>
    %c0_20 = arith.constant 0 : index
    %c0_21 = arith.constant 0 : index
    %27 = vector.load %arg7[%c0_20, %c0_21] : memref<8x128xf32, #tpu.memory_space<vmem>>, vector<8x128xf32>
    tpu.vector_store %arg7[%c0_20, %c0_21], %26 {strides = array<i32>} : memref<8x128xf32, #tpu.memory_space<vmem>>, vector<8x128xf32>,
    return
  }
  func.func @transform_0(%arg0: i32) -> (i32, i32) {
    %c0_i32 = arith.constant 0 : i32
    %c0_i32_0 = arith.constant 0 : i32
    return %arg0, %c0_i32 : i32, i32
  }
  func.func @transform_1(%arg0: i32) -> (i32, i32) {
    %c0_i32 = arith.constant 0 : i32
    %c0_i32_0 = arith.constant 0 : i32
    %c0_i32_1 = arith.constant 0 : i32
    return %c0_i32, %c0_i32_0 : i32, i32
  }
  func.func @transform_2(%arg0: i32) -> (i32, i32) {
    %c0_i32 = arith.constant 0 : i32
    %c0_i32_0 = arith.constant 0 : i32
    %c0_i32_1 = arith.constant 0 : i32
    return %c0_i32, %c0_i32_0 : i32, i32
  }
  func.func @transform_3(%arg0: i32) -> (i32, i32) {
    %c0_i32 = arith.constant 0 : i32
    %c0_i32_0 = arith.constant 0 : i32
    %c0_i32_1 = arith.constant 0 : i32
    return %c0_i32, %c0_i32_0 : i32, i32
  }
  func.func @transform_4(%arg0: i32) -> (i32, i32) {
    %c0_i32 = arith.constant 0 : i32
    %c0_i32_0 = arith.constant 0 : i32
    %c0_i32_1 = arith.constant 0 : i32
    return %c0_i32, %c0_i32_0 : i32, i32
  }
  func.func @transform_5(%arg0: i32) -> (i32, i32) {
    %c0_i32 = arith.constant 0 : i32
    %c0_i32_0 = arith.constant 0 : i32
    %c0_i32_1 = arith.constant 0 : i32
    return %c0_i32, %c0_i32_0 : i32, i32
  }
  func.func @transform_6(%arg0: i32) -> (i32, i32) {
    %c0_i32 = arith.constant 0 : i32
    %c0_i32_0 = arith.constant 0 : i32
    return %arg0, %c0_i32 : i32, i32
  }
}

</mosaic_0001>

<bundles_post_ra>
// kernel: tpu_custom_call.1
= control target key start
LH: loop header
LB: loop body
LE: loop exit
PB: predicated region body
PF: predicated region fallthrough
CT: control target
= control target key end

     0   :  { %11 = vsyncpa [#allocation3], 0  ;;  %s1058_s0 = inlined_call_operand.hbm [shape: f32[8,32], index: 0, kind: input, shape index: {}]   ;;  %s1059_s1 = inlined_call_operand.hbm [shape: f32[32,128], index: 1, kind: input, shape index: {}]   ;;  %s1060_s2 = inlined_call_operand.hbm [shape: f32[128,128], index: 2, kind: input, shape index: {}]   ;;  %s1061_s3 = inlined_call_operand.hbm [shape: f32[128,128], index: 3, kind: input, shape index: {}]   ;;  %s1062_s4 = inlined_call_operand.hbm [shape: f32[128,128], index: 4, kind: input, shape index: {}]   ;;  %s1063_s5 = inlined_call_operand.vmem [shape: f32[1,512], index: 5, kind: input, shape index: {}]   ;;  %s1064_s6 = inlined_call_operand.hbm [shape: f32[8,128], index: 6, kind: output, shape index: {}]  }
   0x1   :  { %12 = vsyncpa [#allocation6], 0 }
   0x2   :  { %13 = vsyncpa [#allocation9], 0 }
   0x3   :  { %14 = vsyncpa [#allocation4], 0  ;;  %s882_s21 = smov [#allocation5]   ;;  %s742_s25 = scalar_lea.hbm %s1059_s1, 512 }
   0x4   :  { %s30_s22 = sshll.u32 %s882_s21, 4  ;;  %p743_p0 = scmp.ne.s32.totalorder %s1059_s1, %s742_s25  ;;  %s31_s22 = int_to_ptr.vmem [resolvable:$true] %s30_s22 }
   0x5   :  { %p746_p1 = scmp.lt.u32.totalorder %s742_s25, %s1059_s1 }
   0x7   :  { %p748_p2 = pnand %p746_p1, %p743_p0 }
   0x9   :  { %751 = shalt.err (!%p748_p2)
}
   0xa   :  { %s752_s30 = scalar_lea.vmem %s31_s22, 512  ;;  %p757_p4 = scmp.lt.s32.totalorder %s31_s22, %s31_s22 }
   0xb   :  { %p753_p3 = scmp.ne.s32.totalorder %s31_s22, %s752_s30  ;;  %p758_p5 = scmp.lt.s32.totalorder %s752_s30, %s752_s30 }
   0xd   :  { %p759_p6 = por %p758_p5, %p757_p4 }
   0xf   :  { %p760_p7 = pnand %p759_p6, %p753_p3 }
  0x11   :  { %763 = shalt.err (!%p760_p7)
}
  0x12   :  { %s883_s7 = smov 128   ;;  %s884_s8 = smov 8  }
  0x13   :  { %36 = dma.hbm_to_vmem [thread:$0]  %s1059_s1, 512, %s31_s22, [#allocation6], %s883_s7, %s883_s7, %s884_s8  }
  0x14   :  { %s885_s11 = smov [#allocation8]   ;;  %s886_s13 = smov [#allocation2]  }
  0x15   :  { %s54_s12 = sshll.u32 %s885_s11, 4  ;;  %s21_s14 = sshll.u32 %s886_s13, 4  ;;  %s55_s12 = int_to_ptr.vmem [resolvable:$true] %s54_s12  ;;  %s22_s14 = int_to_ptr.vmem [resolvable:$true] %s21_s14 }
  0x16   :  { %s764_s17 = scalar_lea.hbm %s1061_s3, 2048 }
  0x17   :  { %p765_p8 = scmp.ne.s32.totalorder %s1061_s3, %s764_s17  ;;  %p768_p9 = scmp.lt.u32.totalorder %s764_s17, %s1061_s3 }
  0x19   :  { %p770_p10 = pnand %p768_p9, %p765_p8 }
  0x1b   :  { %773 = shalt.err (!%p770_p10)
}
  0x1c   :  { %s774_s1 = scalar_lea.vmem %s55_s12, 2048  ;;  %p779_p12 = scmp.lt.s32.totalorder %s55_s12, %s55_s12 }
  0x1d   :  { %p775_p11 = scmp.ne.s32.totalorder %s55_s12, %s774_s1  ;;  %p780_p13 = scmp.lt.s32.totalorder %s774_s1, %s774_s1 }
  0x1f   :  { %p781_p0 = por %p780_p13, %p779_p12 }
  0x21   :  { %p782_p1 = pnand %p781_p0, %p775_p11 }
  0x23   :  { %785 = shalt.err (!%p782_p1)
}
  0x24   :  { %60 = dma.hbm_to_vmem [thread:$0]  %s1061_s3, 2048, %s55_s12, [#allocation9], %s883_s7, %s883_s7, %s884_s8  }
  0x25   :  { %s786_s26 = scalar_lea.hbm %s1058_s0, 128 }
  0x26   :  { %p787_p2 = scmp.ne.s32.totalorder %s1058_s0, %s786_s26  ;;  %p790_p3 = scmp.lt.u32.totalorder %s786_s26, %s1058_s0 }
  0x28   :  { %p792_p4 = pnand %p790_p3, %p787_p2 }
  0x2a   :  { %795 = shalt.err (!%p792_p4)
}
  0x2b   :  { %s796_s9 = scalar_lea.vmem %s22_s14, 128  ;;  %p801_p6 = scmp.lt.s32.totalorder %s22_s14, %s22_s14 }
  0x2c   :  { %p797_p5 = scmp.ne.s32.totalorder %s22_s14, %s796_s9  ;;  %p802_p7 = scmp.lt.s32.totalorder %s796_s9, %s796_s9 }
  0x2e   :  { %p803_p8 = por %p802_p7, %p801_p6 }
  0x30   :  { %p804_p9 = pnand %p803_p8, %p797_p5 }
  0x32   :  { %807 = shalt.err (!%p804_p9)
}
  0x33   :  { %24 = dma.hbm_to_vmem [thread:$0]  %s1058_s0, 128, %s22_s14, [#allocation3]  }
  0x34   :  { %s887_s11 = smov [#allocation7]   ;;  %s888_s13 = smov [#allocation10]  }
  0x35   :  { %s42_s12 = sshll.u32 %s887_s11, 4  ;;  %s66_s15 = sshll.u32 %s888_s13, 4  ;;  %s43_s12 = int_to_ptr.vmem [resolvable:$true] %s42_s12  ;;  %s67_s15 = int_to_ptr.vmem [resolvable:$true] %s66_s15 }
  0x36   :  { %s808_s18 = scalar_lea.hbm %s1060_s2, 2048 }
  0x37   :  { %p809_p10 = scmp.ne.s32.totalorder %s1060_s2, %s808_s18  ;;  %p812_p11 = scmp.lt.u32.totalorder %s808_s18, %s1060_s2 }
  0x39   :  { %p814_p12 = pnand %p812_p11, %p809_p10 }
  0x3b   :  { %817 = shalt.err (!%p814_p12)
}
  0x3c   :  { %s818_s0 = scalar_lea.vmem %s43_s12, 2048  ;;  %p823_p0 = scmp.lt.s32.totalorder %s43_s12, %s43_s12 }
  0x3d   :  { %p819_p13 = scmp.ne.s32.totalorder %s43_s12, %s818_s0  ;;  %p824_p1 = scmp.lt.s32.totalorder %s818_s0, %s818_s0 }
  0x3f   :  { %p825_p2 = por %p824_p1, %p823_p0 }
  0x41   :  { %p826_p3 = pnand %p825_p2, %p819_p13 }
  0x43   :  { %829 = shalt.err (!%p826_p3)
}
  0x44   :  { %48 = dma.hbm_to_vmem [thread:$0]  %s1060_s2, 2048, %s43_s12, [#allocation6], %s883_s7, %s883_s7, %s884_s8  }
  0x45   :  { %s830_s25 = scalar_lea.hbm %s1062_s4, 2048 }
  0x46   :  { %p831_p4 = scmp.ne.s32.totalorder %s1062_s4, %s830_s25  ;;  %p834_p5 = scmp.lt.u32.totalorder %s830_s25, %s1062_s4 }
  0x48   :  { %p836_p6 = pnand %p834_p5, %p831_p4 }
  0x4a   :  { %839 = shalt.err (!%p836_p6)
}
  0x4b   :  { %s840_s30 = scalar_lea.vmem %s67_s15, 2048  ;;  %p845_p8 = scmp.lt.s32.totalorder %s67_s15, %s67_s15 }
  0x4c   :  { %p841_p7 = scmp.ne.s32.totalorder %s67_s15, %s840_s30  ;;  %p846_p9 = scmp.lt.s32.totalorder %s840_s30, %s840_s30 }
  0x4e   :  { %p847_p10 = por %p846_p9, %p845_p8 }
  0x50   :  { %p848_p11 = pnand %p847_p10, %p841_p7 }
  0x52   :  { %851 = shalt.err (!%p848_p11)
}
  0x53   :  { %72 = dma.hbm_to_vmem [thread:$0]  %s1062_s4, 2048, %s67_s15, [#allocation9], %s883_s7, %s883_s7, %s884_s8  }
  0x54   :  { %874 = dma.done.wait [#allocation3], 128  }
  0x55   :  { %875 = vsyncadd [#allocation3], 4294967168 }
  0x56   :  { %876 = dma.done.wait [#allocation6], 2560  }
  0x57   :  { %877 = vsyncadd [#allocation6], 4294964736 }
  0x58   :  { %878 = dma.done.wait [#allocation9], 4096  }
  0x59   :  { %879 = vsyncadd [#allocation9], 4294963200  ;;  %v889_v0 = vmov 0.0|0.0   ;;  %vm890_vm0 = vmmov 0   ;;  %v891_v1 = vmov 0.0   ;;  %v91_v2 = vld [vmem:[#allocation5] sm:$0xff] }
  0x5a   :  { %653 = vmatprep.subr.bf16.mxu0 %v889_v0  ;;  %545 = vmatprep.mubr.msk.f32.mxu0 %vm890_vm0, %v891_v1  ;;  %v92_v3 = vld [vmem:[#allocation5 + $0x8] sm:$0xff]  ;;  %v93_v4 = vld [vmem:[#allocation5 + $0x10] sm:$0xff]  ;;  %v94_v6 = vld [vmem:[#allocation5 + $0x18] sm:$0xff]  ;;  %vm102_vm1 = vcmask 261120   ;;  %s892_s15 = smov [#allocation11]  }
  0x5b   :  { %659 = vmatprep.subr.bf16.mxu1 %v889_v0  ;;  %580 = vmatprep.mubr.msk.f32.mxu1 %vm890_vm0, %v891_v1  ;;  %v654_v5 = vpack.c.bf16 %v92_v3, %v91_v2  ;;  %v177_v7 = vld [vmem:[#allocation7] sm:$0xff]  ;;  %v178_v8 = vld [vmem:[#allocation7 + $0x8] sm:$0xff]  ;;  %v179_v9 = vld [vmem:[#allocation7 + $0x10] sm:$0xff]  ;;  %v657_v11 = vpack.c.bf16 %v94_v6, %v93_v4  ;;  %s465_s16 = sshll.u32 %s892_s15, 4  ;;  %s466_s16 = int_to_ptr.vmem [resolvable:$true] %s465_s16 }
  0x5c   :  { %v180_v10 = vld [vmem:[#allocation7 + $0x18] sm:$0xff]  ;;  %v660_v12 = vpack.c.bf16 %v178_v8, %v177_v7  ;;  %v181_v14 = vld [vmem:[#allocation7 + $0x20] sm:$0xff]  ;;  %v182_v15 = vld [vmem:[#allocation7 + $0x28] sm:$0xff]  ;;  %s852_s17 = scalar_lea.vmem %s466_s16, 128  ;;  %p857_p13 = scmp.lt.s32.totalorder %s466_s16, %s466_s16 }
  0x5d   :  { %655 = vmatpush3.bf16.msra.mxu0 %v654_v5  ;;  %v663_v13 = vpack.c.bf16 %v180_v10, %v179_v9  ;;  %v90_v16 = vld [vmem:[#allocation2] sm:$0xff]  ;;  %v666_v17 = vpack.c.bf16 %v182_v15, %v181_v14  ;;  %v183_v18 = vld [vmem:[#allocation7 + $0x30] sm:$0xff]  ;;  %v185_v21 = vld [vmem:[#allocation7 + $0x40] sm:$0xff]  ;;  %p853_p12 = scmp.ne.s32.totalorder %s466_s16, %s852_s17  ;;  %p858_p0 = scmp.lt.s32.totalorder %s852_s17, %s852_s17 }
  0x5e   :  { %656 = vmatprep.subr.bf16.mxu0 %v889_v0  ;;  %661 = vmatpush3.bf16.msra.mxu1 %v660_v12  ;;  %v184_v19 = vld [vmem:[#allocation7 + $0x38] sm:$0xff]  ;;  %v186_v22 = vld [vmem:[#allocation7 + $0x48] sm:$0xff]  ;;  %v187_v24 = vld [vmem:[#allocation7 + $0x50] sm:$0xff] }
  0x5f   :  { %662 = vmatprep.subr.bf16.mxu1 %v889_v0  ;;  %v669_v20 = vpack.c.bf16 %v184_v19, %v183_v18  ;;  %v672_v23 = vpack.c.bf16 %v186_v22, %v185_v21  ;;  %v188_v25 = vld [vmem:[#allocation7 + $0x58] sm:$0xff]  ;;  %v189_v27 = vld [vmem:[#allocation7 + $0x60] sm:$0xff]  ;;  %v190_v28 = vld [vmem:[#allocation7 + $0x68] sm:$0xff]  ;;  %p859_p1 = por %p858_p0, %p857_p13 }
  0x60   :  { %v675_v26 = vpack.c.bf16 %v188_v25, %v187_v24  ;;  %v678_v29 = vpack.c.bf16 %v190_v28, %v189_v27  ;;  %v191_v30 = vld [vmem:[#allocation7 + $0x70] sm:$0xff]  ;;  %v192_v31 = vld [vmem:[#allocation7 + $0x78] sm:$0xff]  ;;  %v271_v33 = vld [vmem:[#allocation8] sm:$0xff] }
  0x61   :  { %658 = vmatpush3.bf16.msra.mxu0 %v657_v11  ;;  %v681_v32 = vpack.c.bf16 %v192_v31, %v191_v30  ;;  %v272_v34 = vld [vmem:[#allocation8 + $0x8] sm:$0xff]  ;;  %v273_v35 = vld [vmem:[#allocation8 + $0x10] sm:$0xff]  ;;  %v274_v37 = vld [vmem:[#allocation8 + $0x18] sm:$0xff]  ;;  %p860_p2 = pnand %p859_p1, %p853_p12 }
  0x62   :  { %683 = vmatprep.subr.bf16.mxu0 %v889_v0  ;;  %664 = vmatpush3.bf16.msra.mxu1 %v663_v13  ;;  %v684_v36 = vpack.c.bf16 %v272_v34, %v271_v33  ;;  %v687_v38 = vpack.c.bf16 %v274_v37, %v273_v35  ;;  %v275_v39 = vld [vmem:[#allocation8 + $0x20] sm:$0xff]  ;;  %v276_v40 = vld [vmem:[#allocation8 + $0x28] sm:$0xff]  ;;  %v277_v42 = vld [vmem:[#allocation8 + $0x30] sm:$0xff] }
  0x63   :  { %665 = vmatprep.subr.bf16.mxu1 %v889_v0  ;;  %v690_v41 = vpack.c.bf16 %v276_v40, %v275_v39  ;;  %v278_v43 = vld [vmem:[#allocation8 + $0x38] sm:$0xff]  ;;  %v279_v45 = vld [vmem:[#allocation8 + $0x40] sm:$0xff]  ;;  %v280_v46 = vld [vmem:[#allocation8 + $0x48] sm:$0xff] }
  0x64   :  { %546 = vmatmul.mubr.msk.f32.vlgmr.msra.gmra.mrb[0].mxu0 %vm102_vm1, %v90_v16  ;;  %v693_v44 = vpack.c.bf16 %v278_v43, %v277_v42  ;;  %v696_v47 = vpack.c.bf16 %v280_v46, %v279_v45  ;;  %v281_v48 = vld [vmem:[#allocation8 + $0x50] sm:$0xff]  ;;  %v282_v49 = vld [vmem:[#allocation8 + $0x58] sm:$0xff]  ;;  %v283_v51 = vld [vmem:[#allocation8 + $0x60] sm:$0xff] }
  0x65   :  { %615 = vmatprep.mubr.msk.f32.mxu0 %vm890_vm0, %v891_v1  ;;  %685 = vmatpush3.bf16.msra.mxu0 %v684_v36  ;;  %v699_v50 = vpack.c.bf16 %v282_v49, %v281_v48  ;;  %v284_v52 = vld [vmem:[#allocation8 + $0x68] sm:$0xff]  ;;  %v476_v54 = vld [vmem:[%s1063_s5] ss:$0 sm:$0xff]  ;;  %v285_v59 = vld [vmem:[#allocation8 + $0x70] sm:$0xff] }
  0x66   :  { %667 = vmatpush3.bf16.msra.mxu1 %v666_v17  ;;  %686 = vmatprep.subr.bf16.mxu0 %v889_v0  ;;  %v702_v53 = vpack.c.bf16 %v284_v52, %v283_v51  ;;  %v286_v60 = vld [vmem:[#allocation8 + $0x78] sm:$0xff]  ;;  %v365_v62 = vld [vmem:[#allocation10] sm:$0xff]  ;;  %v366_v63 = vld [vmem:[#allocation10 + $0x8] sm:$0xff] }
  0x67   :  { %668 = vmatprep.subr.bf16.mxu1 %v889_v0  ;;  %v705_v61 = vpack.c.bf16 %v286_v60, %v285_v59  ;;  %v367_v2 = vld [vmem:[#allocation10 + $0x10] sm:$0xff]  ;;  %v708_v3 = vpack.c.bf16 %v366_v63, %v365_v62  ;;  %v368_v4 = vld [vmem:[#allocation10 + $0x18] sm:$0xff]  ;;  %v369_v6 = vld [vmem:[#allocation10 + $0x20] sm:$0xff] }
  0x68   :  { %v711_v5 = vpack.c.bf16 %v368_v4, %v367_v2  ;;  %v370_v7 = vld [vmem:[#allocation10 + $0x28] sm:$0xff]  ;;  %v372_v9 = vld [vmem:[#allocation10 + $0x38] sm:$0xff]  ;;  %v373_v11 = vld [vmem:[#allocation10 + $0x40] sm:$0xff] }
  0x69   :  { %688 = vmatpush3.bf16.msra.mxu0 %v687_v38  ;;  %v714_v8 = vpack.c.bf16 %v370_v7, %v369_v6  ;;  %v374_v12 = vld [vmem:[#allocation10 + $0x48] sm:$0xff]  ;;  %v375_v14 = vld [vmem:[#allocation10 + $0x50] sm:$0xff]  ;;  %v376_v15 = vld [vmem:[#allocation10 + $0x58] sm:$0xff] }
  0x6a   :  { %670 = vmatpush3.bf16.msra.mxu1 %v669_v20  ;;  %689 = vmatprep.subr.bf16.mxu0 %v889_v0  ;;  %v720_v13 = vpack.c.bf16 %v374_v12, %v373_v11  ;;  %v723_v16 = vpack.c.bf16 %v376_v15, %v375_v14  ;;  %v377_v17 = vld [vmem:[#allocation10 + $0x60] sm:$0xff]  ;;  %v378_v18 = vld [vmem:[#allocation10 + $0x68] sm:$0xff]  ;;  %v478_v20 = vld [vmem:[%s1063_s5 + $0x1] ss:$0 sm:$0xff] }
  0x6b   :  { %671 = vmatprep.subr.bf16.mxu1 %v889_v0  ;;  %v726_v19 = vpack.c.bf16 %v378_v18, %v377_v17  ;;  %v379_v25 = vld [vmem:[#allocation10 + $0x70] sm:$0xff]  ;;  %v479_v28 = vld [vmem:[%s1063_s5 + $0x2] ss:$0 sm:$0xff] }
  0x6d   :  { %691 = vmatpush3.bf16.msra.mxu0 %v690_v41 }
  0x6e   :  { %673 = vmatpush3.bf16.msra.mxu1 %v672_v23  ;;  %692 = vmatprep.subr.bf16.mxu0 %v889_v0 }
  0x6f   :  { %674 = vmatprep.subr.bf16.mxu1 %v889_v0 }
  0x71   :  { %694 = vmatpush3.bf16.msra.mxu0 %v693_v44 }
  0x72   :  { %676 = vmatpush3.bf16.msra.mxu1 %v675_v26  ;;  %695 = vmatprep.subr.bf16.mxu0 %v889_v0  ;;  %v380_v26 = vld [vmem:[#allocation10 + $0x78] sm:$0xff] }
  0x73   :  { %677 = vmatprep.subr.bf16.mxu1 %v889_v0  ;;  %v729_v27 = vpack.c.bf16 %v380_v26, %v379_v25 }
  0x75   :  { %697 = vmatpush3.bf16.msra.mxu0 %v696_v47 }
  0x76   :  { %679 = vmatpush3.bf16.msra.mxu1 %v678_v29  ;;  %698 = vmatprep.subr.bf16.mxu0 %v889_v0 }
  0x77   :  { %680 = vmatprep.subr.bf16.mxu1 %v889_v0 }
  0x79   :  { %700 = vmatpush3.bf16.msra.mxu0 %v699_v50 }
  0x7a   :  { %682 = vmatpush3.bf16.msra.mxu1 %v681_v32  ;;  %701 = vmatprep.subr.bf16.mxu0 %v889_v0  ;;  %v480_v32 = vld [vmem:[%s1063_s5 + $0x3] ss:$0 sm:$0xff] }
  0x7b   :  { %707 = vmatprep.subr.bf16.mxu1 %v889_v0 }
  0x7d   :  { %703 = vmatpush3.bf16.msra.mxu0 %v702_v53 }
  0x7e   :  { %704 = vmatprep.subr.bf16.mxu0 %v889_v0 }
  0x81   :  { %706 = vmatpush3.bf16.msra.mxu0 %v705_v61 }
 0x137   :  { %v172_v55 = vpop.f32.mrb[0].mxu0 }
 0x138   :  { %v173_v56 = vadd.f32 %v476_v54, %v172_v55  ;;  %v547_v57 = vpop.f32.mrb[1].mxu0 }
 0x13a   :  { %v176_v58 = vmax.f32 %v173_v56, 0.0 }
 0x13c   :  { %581 = vmatmul.mubr.f32.vlgmr.msra.gmra.mrb[0].mxu1 %v176_v58 }
 0x13d   :  { %650 = vmatprep.mubr.msk.f32.mxu1 %vm890_vm0, %v891_v1  ;;  %709 = vmatpush3.bf16.msra.mxu1 %v708_v3  ;;  %v371_v1 = vld [vmem:[#allocation10 + $0x30] sm:$0xff] }
 0x13e   :  { %710 = vmatprep.subr.bf16.mxu1 %v889_v0  ;;  %v717_v10 = vpack.c.bf16 %v372_v9, %v371_v1 }
 0x141   :  { %712 = vmatpush3.bf16.msra.mxu1 %v711_v5 }
 0x142   :  { %713 = vmatprep.subr.bf16.mxu1 %v889_v0 }
 0x145   :  { %715 = vmatpush3.bf16.msra.mxu1 %v714_v8 }
 0x146   :  { %716 = vmatprep.subr.bf16.mxu1 %v889_v0 }
 0x149   :  { %718 = vmatpush3.bf16.msra.mxu1 %v717_v10 }
 0x14a   :  { %719 = vmatprep.subr.bf16.mxu1 %v889_v0 }
 0x14d   :  { %721 = vmatpush3.bf16.msra.mxu1 %v720_v13 }
 0x14e   :  { %722 = vmatprep.subr.bf16.mxu1 %v889_v0 }
 0x151   :  { %724 = vmatpush3.bf16.msra.mxu1 %v723_v16 }
 0x152   :  { %725 = vmatprep.subr.bf16.mxu1 %v889_v0 }
 0x155   :  { %727 = vmatpush3.bf16.msra.mxu1 %v726_v19 }
 0x156   :  { %728 = vmatprep.subr.bf16.mxu1 %v889_v0 }
 0x159   :  { %730 = vmatpush3.bf16.msra.mxu1 %v729_v27 }
 0x20f   :  { %v266_v21 = vpop.f32.mrb[0].mxu1 }
 0x210   :  { %v267_v22 = vadd.f32 %v478_v20, %v266_v21  ;;  %v582_v23 = vpop.f32.mrb[1].mxu1 }
 0x212   :  { %v270_v24 = vmax.f32 %v267_v22, 0.0 }
 0x214   :  { %616 = vmatmul.mubr.f32.vlgmr.msra.gmra.mrb[2].mxu0 %v270_v24 }
 0x2e7   :  { %v360_v29 = vpop.f32.mrb[2].mxu0 }
 0x2e8   :  { %v361_v30 = vadd.f32 %v479_v28, %v360_v29  ;;  %v617_v0 = vpop.f32.mrb[3].mxu0 }
 0x2ea   :  { %v364_v31 = vmax.f32 %v361_v30, 0.0 }
 0x2ec   :  { %651 = vmatmul.mubr.f32.vlgmr.msra.gmra.mrb[2].mxu1 %v364_v31 }
 0x3bf   :  { %v454_v33 = vpop.f32.mrb[2].mxu1 }
 0x3c0   :  { %v455_v34 = vadd.f32 %v480_v32, %v454_v33  ;;  %v652_v35 = vpop.f32.mrb[3].mxu1 }
 0x3c2   :  { %458 = vst [vmem:[#allocation11] sm:$0xff] %v455_v34 }
 0x3c3   :  { %863 = shalt.err (!%p860_p2)
}
 0x3c4   :  { %s864_s20 = scalar_lea.hbm %s1064_s6, 128 }
 0x3c5   :  { %p865_p3 = scmp.ne.s32.totalorder %s1064_s6, %s864_s20  ;;  %p868_p4 = scmp.lt.u32.totalorder %s864_s20, %s1064_s6 }
 0x3c7   :  { %p870_p5 = pnand %p868_p4, %p865_p3 }
 0x3c9   :  { %873 = shalt.err (!%p870_p5)
}
 0x3ca   :  { %468 = dma.vmem_to_hbm [thread:$0]  %s466_s16, 128, %s1064_s6, [#allocation4]  }
 0x3cb   :  { %880 = dma.done.wait [#allocation4], 128  }
 0x3cc   :  { %881 = vsyncadd [#allocation4], 4294967168 }
 0x3cd   :  { %472 = vsyncpa [#allocation3], 1 }
 0x3ce   :  { %473 = vsyncpa [#allocation6], 1 }
 0x3cf   :  { %474 = vsyncpa [#allocation9], 1 }
 0x3d0   :  { %475 = vsyncpa [#allocation4], 1 }

// kernel: tpu_custom_call.1
= control target key start
LH: loop header
LB: loop body
LE: loop exit
PB: predicated region body
PF: predicated region fallthrough
CT: control target
= control target key end

     0   :  { %11 = vsyncpa [#allocation3], 0  ;;  %s1058_s0 = inlined_call_operand.hbm [shape: f32[8,32], index: 0, kind: input, shape index: {}]   ;;  %s1059_s1 = inlined_call_operand.hbm [shape: f32[32,128], index: 1, kind: input, shape index: {}]   ;;  %s1060_s2 = inlined_call_operand.hbm [shape: f32[128,128], index: 2, kind: input, shape index: {}]   ;;  %s1061_s3 = inlined_call_operand.hbm [shape: f32[128,128], index: 3, kind: input, shape index: {}]   ;;  %s1062_s4 = inlined_call_operand.hbm [shape: f32[128,128], index: 4, kind: input, shape index: {}]   ;;  %s1063_s5 = inlined_call_operand.vmem [shape: f32[1,512], index: 5, kind: input, shape index: {}]   ;;  %s1064_s6 = inlined_call_operand.hbm [shape: f32[8,128], index: 6, kind: output, shape index: {}]  }
   0x1   :  { %12 = vsyncpa [#allocation6], 0 }
   0x2   :  { %13 = vsyncpa [#allocation9], 0 }
   0x3   :  { %14 = vsyncpa [#allocation4], 0  ;;  %s882_s21 = smov [#allocation5]   ;;  %s742_s25 = scalar_lea.hbm %s1059_s1, 512 }
   0x4   :  { %s30_s22 = sshll.u32 %s882_s21, 4  ;;  %p743_p0 = scmp.ne.s32.totalorder %s1059_s1, %s742_s25  ;;  %s31_s22 = int_to_ptr.vmem [resolvable:$true] %s30_s22 }
   0x5   :  { %p746_p1 = scmp.lt.u32.totalorder %s742_s25, %s1059_s1 }
   0x7   :  { %p748_p2 = pnand %p746_p1, %p743_p0 }
   0x9   :  { %751 = shalt.err (!%p748_p2)
}
   0xa   :  { %s752_s30 = scalar_lea.vmem %s31_s22, 512  ;;  %p757_p4 = scmp.lt.s32.totalorder %s31_s22, %s31_s22 }
   0xb   :  { %p753_p3 = scmp.ne.s32.totalorder %s31_s22, %s752_s30  ;;  %p758_p5 = scmp.lt.s32.totalorder %s752_s30, %s752_s30 }
   0xd   :  { %p759_p6 = por %p758_p5, %p757_p4 }
   0xf   :  { %p760_p7 = pnand %p759_p6, %p753_p3 }
  0x11   :  { %763 = shalt.err (!%p760_p7)
}
  0x12   :  { %s883_s7 = smov 128   ;;  %s884_s8 = smov 8  }
  0x13   :  { %36 = dma.hbm_to_vmem [thread:$0]  %s1059_s1, 512, %s31_s22, [#allocation6], %s883_s7, %s883_s7, %s884_s8  }
  0x14   :  { %s885_s11 = smov [#allocation8]   ;;  %s886_s13 = smov [#allocation2]  }
  0x15   :  { %s54_s12 = sshll.u32 %s885_s11, 4  ;;  %s21_s14 = sshll.u32 %s886_s13, 4  ;;  %s55_s12 = int_to_ptr.vmem [resolvable:$true] %s54_s12  ;;  %s22_s14 = int_to_ptr.vmem [resolvable:$true] %s21_s14 }
  0x16   :  { %s764_s17 = scalar_lea.hbm %s1061_s3, 2048 }
  0x17   :  { %p765_p8 = scmp.ne.s32.totalorder %s1061_s3, %s764_s17  ;;  %p768_p9 = scmp.lt.u32.totalorder %s764_s17, %s1061_s3 }
  0x19   :  { %p770_p10 = pnand %p768_p9, %p765_p8 }
  0x1b   :  { %773 = shalt.err (!%p770_p10)
}
  0x1c   :  { %s774_s1 = scalar_lea.vmem %s55_s12, 2048  ;;  %p779_p12 = scmp.lt.s32.totalorder %s55_s12, %s55_s12 }
  0x1d   :  { %p775_p11 = scmp.ne.s32.totalorder %s55_s12, %s774_s1  ;;  %p780_p13 = scmp.lt.s32.totalorder %s774_s1, %s774_s1 }
  0x1f   :  { %p781_p0 = por %p780_p13, %p779_p12 }
  0x21   :  { %p782_p1 = pnand %p781_p0, %p775_p11 }
  0x23   :  { %785 = shalt.err (!%p782_p1)
}
  0x24   :  { %60 = dma.hbm_to_vmem [thread:$0]  %s1061_s3, 2048, %s55_s12, [#allocation9], %s883_s7, %s883_s7, %s884_s8  }
  0x25   :  { %s786_s26 = scalar_lea.hbm %s1058_s0, 128 }
  0x26   :  { %p787_p2 = scmp.ne.s32.totalorder %s1058_s0, %s786_s26  ;;  %p790_p3 = scmp.lt.u32.totalorder %s786_s26, %s1058_s0 }
  0x28   :  { %p792_p4 = pnand %p790_p3, %p787_p2 }
  0x2a   :  { %795 = shalt.err (!%p792_p4)
}
  0x2b   :  { %s796_s9 = scalar_lea.vmem %s22_s14, 128  ;;  %p801_p6 = scmp.lt.s32.totalorder %s22_s14, %s22_s14 }
  0x2c   :  { %p797_p5 = scmp.ne.s32.totalorder %s22_s14, %s796_s9  ;;  %p802_p7 = scmp.lt.s32.totalorder %s796_s9, %s796_s9 }
  0x2e   :  { %p803_p8 = por %p802_p7, %p801_p6 }
  0x30   :  { %p804_p9 = pnand %p803_p8, %p797_p5 }
  0x32   :  { %807 = shalt.err (!%p804_p9)
}
  0x33   :  { %24 = dma.hbm_to_vmem [thread:$0]  %s1058_s0, 128, %s22_s14, [#allocation3]  }
  0x34   :  { %s887_s11 = smov [#allocation7]   ;;  %s888_s13 = smov [#allocation10]  }
  0x35   :  { %s42_s12 = sshll.u32 %s887_s11, 4  ;;  %s66_s15 = sshll.u32 %s888_s13, 4  ;;  %s43_s12 = int_to_ptr.vmem [resolvable:$true] %s42_s12  ;;  %s67_s15 = int_to_ptr.vmem [resolvable:$true] %s66_s15 }
  0x36   :  { %s808_s18 = scalar_lea.hbm %s1060_s2, 2048 }
  0x37   :  { %p809_p10 = scmp.ne.s32.totalorder %s1060_s2, %s808_s18  ;;  %p812_p11 = scmp.lt.u32.totalorder %s808_s18, %s1060_s2 }
  0x39   :  { %p814_p12 = pnand %p812_p11, %p809_p10 }
  0x3b   :  { %817 = shalt.err (!%p814_p12)
}
  0x3c   :  { %s818_s0 = scalar_lea.vmem %s43_s12, 2048  ;;  %p823_p0 = scmp.lt.s32.totalorder %s43_s12, %s43_s12 }
  0x3d   :  { %p819_p13 = scmp.ne.s32.totalorder %s43_s12, %s818_s0  ;;  %p824_p1 = scmp.lt.s32.totalorder %s818_s0, %s818_s0 }
  0x3f   :  { %p825_p2 = por %p824_p1, %p823_p0 }
  0x41   :  { %p826_p3 = pnand %p825_p2, %p819_p13 }
  0x43   :  { %829 = shalt.err (!%p826_p3)
}
  0x44   :  { %48 = dma.hbm_to_vmem [thread:$0]  %s1060_s2, 2048, %s43_s12, [#allocation6], %s883_s7, %s883_s7, %s884_s8  }
  0x45   :  { %s830_s25 = scalar_lea.hbm %s1062_s4, 2048 }
  0x46   :  { %p831_p4 = scmp.ne.s32.totalorder %s1062_s4, %s830_s25  ;;  %p834_p5 = scmp.lt.u32.totalorder %s830_s25, %s1062_s4 }
  0x48   :  { %p836_p6 = pnand %p834_p5, %p831_p4 }
  0x4a   :  { %839 = shalt.err (!%p836_p6)
}
  0x4b   :  { %s840_s30 = scalar_lea.vmem %s67_s15, 2048  ;;  %p845_p8 = scmp.lt.s32.totalorder %s67_s15, %s67_s15 }
  0x4c   :  { %p841_p7 = scmp.ne.s32.totalorder %s67_s15, %s840_s30  ;;  %p846_p9 = scmp.lt.s32.totalorder %s840_s30, %s840_s30 }
  0x4e   :  { %p847_p10 = por %p846_p9, %p845_p8 }
  0x50   :  { %p848_p11 = pnand %p847_p10, %p841_p7 }
  0x52   :  { %851 = shalt.err (!%p848_p11)
}
  0x53   :  { %72 = dma.hbm_to_vmem [thread:$0]  %s1062_s4, 2048, %s67_s15, [#allocation9], %s883_s7, %s883_s7, %s884_s8  }
  0x54   :  { %874 = dma.done.wait [#allocation3], 128  }
  0x55   :  { %875 = vsyncadd [#allocation3], 4294967168 }
  0x56   :  { %876 = dma.done.wait [#allocation6], 2560  }
  0x57   :  { %877 = vsyncadd [#allocation6], 4294964736 }
  0x58   :  { %878 = dma.done.wait [#allocation9], 4096  }
  0x59   :  { %879 = vsyncadd [#allocation9], 4294963200  ;;  %v889_v0 = vmov 0.0|0.0   ;;  %vm890_vm0 = vmmov 0   ;;  %v891_v1 = vmov 0.0   ;;  %v91_v2 = vld [vmem:[#allocation5] sm:$0xff] }
  0x5a   :  { %653 = vmatprep.subr.bf16.mxu0 %v889_v0  ;;  %545 = vmatprep.mubr.msk.f32.mxu0 %vm890_vm0, %v891_v1  ;;  %v92_v3 = vld [vmem:[#allocation5 + $0x8] sm:$0xff]  ;;  %v93_v4 = vld [vmem:[#allocation5 + $0x10] sm:$0xff]  ;;  %v94_v6 = vld [vmem:[#allocation5 + $0x18] sm:$0xff]  ;;  %vm102_vm1 = vcmask 261120   ;;  %s892_s15 = smov [#allocation11]  }
  0x5b   :  { %659 = vmatprep.subr.bf16.mxu1 %v889_v0  ;;  %580 = vmatprep.mubr.msk.f32.mxu1 %vm890_vm0, %v891_v1  ;;  %v654_v5 = vpack.c.bf16 %v92_v3, %v91_v2  ;;  %v177_v7 = vld [vmem:[#allocation7] sm:$0xff]  ;;  %v178_v8 = vld [vmem:[#allocation7 + $0x8] sm:$0xff]  ;;  %v179_v9 = vld [vmem:[#allocation7 + $0x10] sm:$0xff]  ;;  %v657_v11 = vpack.c.bf16 %v94_v6, %v93_v4  ;;  %s465_s16 = sshll.u32 %s892_s15, 4  ;;  %s466_s16 = int_to_ptr.vmem [resolvable:$true] %s465_s16 }
  0x5c   :  { %v180_v10 = vld [vmem:[#allocation7 + $0x18] sm:$0xff]  ;;  %v660_v12 = vpack.c.bf16 %v178_v8, %v177_v7  ;;  %v181_v14 = vld [vmem:[#allocation7 + $0x20] sm:$0xff]  ;;  %v182_v15 = vld [vmem:[#allocation7 + $0x28] sm:$0xff]  ;;  %s852_s17 = scalar_lea.vmem %s466_s16, 128  ;;  %p857_p13 = scmp.lt.s32.totalorder %s466_s16, %s466_s16 }
  0x5d   :  { %655 = vmatpush3.bf16.msra.mxu0 %v654_v5  ;;  %v663_v13 = vpack.c.bf16 %v180_v10, %v179_v9  ;;  %v90_v16 = vld [vmem:[#allocation2] sm:$0xff]  ;;  %v666_v17 = vpack.c.bf16 %v182_v15, %v181_v14  ;;  %v183_v18 = vld [vmem:[#allocation7 + $0x30] sm:$0xff]  ;;  %v185_v21 = vld [vmem:[#allocation7 + $0x40] sm:$0xff]  ;;  %p853_p12 = scmp.ne.s32.totalorder %s466_s16, %s852_s17  ;;  %p858_p0 = scmp.lt.s32.totalorder %s852_s17, %s852_s17 }
  0x5e   :  { %656 = vmatprep.subr.bf16.mxu0 %v889_v0  ;;  %661 = vmatpush3.bf16.msra.mxu1 %v660_v12  ;;  %v184_v19 = vld [vmem:[#allocation7 + $0x38] sm:$0xff]  ;;  %v186_v22 = vld [vmem:[#allocation7 + $0x48] sm:$0xff]  ;;  %v187_v24 = vld [vmem:[#allocation7 + $0x50] sm:$0xff] }
  0x5f   :  { %662 = vmatprep.subr.bf16.mxu1 %v889_v0  ;;  %v669_v20 = vpack.c.bf16 %v184_v19, %v183_v18  ;;  %v672_v23 = vpack.c.bf16 %v186_v22, %v185_v21  ;;  %v188_v25 = vld [vmem:[#allocation7 + $0x58] sm:$0xff]  ;;  %v189_v27 = vld [vmem:[#allocation7 + $0x60] sm:$0xff]  ;;  %v190_v28 = vld [vmem:[#allocation7 + $0x68] sm:$0xff]  ;;  %p859_p1 = por %p858_p0, %p857_p13 }
  0x60   :  { %v675_v26 = vpack.c.bf16 %v188_v25, %v187_v24  ;;  %v678_v29 = vpack.c.bf16 %v190_v28, %v189_v27  ;;  %v191_v30 = vld [vmem:[#allocation7 + $0x70] sm:$0xff]  ;;  %v192_v31 = vld [vmem:[#allocation7 + $0x78] sm:$0xff]  ;;  %v271_v33 = vld [vmem:[#allocation8] sm:$0xff] }
  0x61   :  { %658 = vmatpush3.bf16.msra.mxu0 %v657_v11  ;;  %v681_v32 = vpack.c.bf16 %v192_v31, %v191_v30  ;;  %v272_v34 = vld [vmem:[#allocation8 + $0x8] sm:$0xff]  ;;  %v273_v35 = vld [vmem:[#allocation8 + $0x10] sm:$0xff]  ;;  %v274_v37 = vld [vmem:[#allocation8 + $0x18] sm:$0xff]  ;;  %p860_p2 = pnand %p859_p1, %p853_p12 }
  0x62   :  { %683 = vmatprep.subr.bf16.mxu0 %v889_v0  ;;  %664 = vmatpush3.bf16.msra.mxu1 %v663_v13  ;;  %v684_v36 = vpack.c.bf16 %v272_v34, %v271_v33  ;;  %v687_v38 = vpack.c.bf16 %v274_v37, %v273_v35  ;;  %v275_v39 = vld [vmem:[#allocation8 + $0x20] sm:$0xff]  ;;  %v276_v40 = vld [vmem:[#allocation8 + $0x28] sm:$0xff]  ;;  %v277_v42 = vld [vmem:[#allocation8 + $0x30] sm:$0xff] }
  0x63   :  { %665 = vmatprep.subr.bf16.mxu1 %v889_v0  ;;  %v690_v41 = vpack.c.bf16 %v276_v40, %v275_v39  ;;  %v278_v43 = vld [vmem:[#allocation8 + $0x38] sm:$0xff]  ;;  %v279_v45 = vld [vmem:[#allocation8 + $0x40] sm:$0xff]  ;;  %v280_v46 = vld [vmem:[#allocation8 + $0x48] sm:$0xff] }
  0x64   :  { %546 = vmatmul.mubr.msk.f32.vlgmr.msra.gmra.mrb[0].mxu0 %vm102_vm1, %v90_v16  ;;  %v693_v44 = vpack.c.bf16 %v278_v43, %v277_v42  ;;  %v696_v47 = vpack.c.bf16 %v280_v46, %v279_v45  ;;  %v281_v48 = vld [vmem:[#allocation8 + $0x50] sm:$0xff]  ;;  %v282_v49 = vld [vmem:[#allocation8 + $0x58] sm:$0xff]  ;;  %v283_v51 = vld [vmem:[#allocation8 + $0x60] sm:$0xff] }
  0x65   :  { %615 = vmatprep.mubr.msk.f32.mxu0 %vm890_vm0, %v891_v1  ;;  %685 = vmatpush3.bf16.msra.mxu0 %v684_v36  ;;  %v699_v50 = vpack.c.bf16 %v282_v49, %v281_v48  ;;  %v284_v52 = vld [vmem:[#allocation8 + $0x68] sm:$0xff]  ;;  %v476_v54 = vld [vmem:[%s1063_s5] ss:$0 sm:$0xff]  ;;  %v285_v59 = vld [vmem:[#allocation8 + $0x70] sm:$0xff] }
  0x66   :  { %667 = vmatpush3.bf16.msra.mxu1 %v666_v17  ;;  %686 = vmatprep.subr.bf16.mxu0 %v889_v0  ;;  %v702_v53 = vpack.c.bf16 %v284_v52, %v283_v51  ;;  %v286_v60 = vld [vmem:[#allocation8 + $0x78] sm:$0xff]  ;;  %v365_v62 = vld [vmem:[#allocation10] sm:$0xff]  ;;  %v366_v63 = vld [vmem:[#allocation10 + $0x8] sm:$0xff] }
  0x67   :  { %668 = vmatprep.subr.bf16.mxu1 %v889_v0  ;;  %v705_v61 = vpack.c.bf16 %v286_v60, %v285_v59  ;;  %v367_v2 = vld [vmem:[#allocation10 + $0x10] sm:$0xff]  ;;  %v708_v3 = vpack.c.bf16 %v366_v63, %v365_v62  ;;  %v368_v4 = vld [vmem:[#allocation10 + $0x18] sm:$0xff]  ;;  %v369_v6 = vld [vmem:[#allocation10 + $0x20] sm:$0xff] }
  0x68   :  { %v711_v5 = vpack.c.bf16 %v368_v4, %v367_v2  ;;  %v370_v7 = vld [vmem:[#allocation10 + $0x28] sm:$0xff]  ;;  %v372_v9 = vld [vmem:[#allocation10 + $0x38] sm:$0xff]  ;;  %v373_v11 = vld [vmem:[#allocation10 + $0x40] sm:$0xff] }
  0x69   :  { %688 = vmatpush3.bf16.msra.mxu0 %v687_v38  ;;  %v714_v8 = vpack.c.bf16 %v370_v7, %v369_v6  ;;  %v374_v12 = vld [vmem:[#allocation10 + $0x48] sm:$0xff]  ;;  %v375_v14 = vld [vmem:[#allocation10 + $0x50] sm:$0xff]  ;;  %v376_v15 = vld [vmem:[#allocation10 + $0x58] sm:$0xff] }
  0x6a   :  { %670 = vmatpush3.bf16.msra.mxu1 %v669_v20  ;;  %689 = vmatprep.subr.bf16.mxu0 %v889_v0  ;;  %v720_v13 = vpack.c.bf16 %v374_v12, %v373_v11  ;;  %v723_v16 = vpack.c.bf16 %v376_v15, %v375_v14  ;;  %v377_v17 = vld [vmem:[#allocation10 + $0x60] sm:$0xff]  ;;  %v378_v18 = vld [vmem:[#allocation10 + $0x68] sm:$0xff]  ;;  %v478_v20 = vld [vmem:[%s1063_s5 + $0x1] ss:$0 sm:$0xff] }
  0x6b   :  { %671 = vmatprep.subr.bf16.mxu1 %v889_v0  ;;  %v726_v19 = vpack.c.bf16 %v378_v18, %v377_v17  ;;  %v379_v25 = vld [vmem:[#allocation10 + $0x70] sm:$0xff]  ;;  %v479_v28 = vld [vmem:[%s1063_s5 + $0x2] ss:$0 sm:$0xff] }
  0x6d   :  { %691 = vmatpush3.bf16.msra.mxu0 %v690_v41 }
  0x6e   :  { %673 = vmatpush3.bf16.msra.mxu1 %v672_v23  ;;  %692 = vmatprep.subr.bf16.mxu0 %v889_v0 }
  0x6f   :  { %674 = vmatprep.subr.bf16.mxu1 %v889_v0 }
  0x71   :  { %694 = vmatpush3.bf16.msra.mxu0 %v693_v44 }
  0x72   :  { %676 = vmatpush3.bf16.msra.mxu1 %v675_v26  ;;  %695 = vmatprep.subr.bf16.mxu0 %v889_v0  ;;  %v380_v26 = vld [vmem:[#allocation10 + $0x78] sm:$0xff] }
  0x73   :  { %677 = vmatprep.subr.bf16.mxu1 %v889_v0  ;;  %v729_v27 = vpack.c.bf16 %v380_v26, %v379_v25 }
  0x75   :  { %697 = vmatpush3.bf16.msra.mxu0 %v696_v47 }
  0x76   :  { %679 = vmatpush3.bf16.msra.mxu1 %v678_v29  ;;  %698 = vmatprep.subr.bf16.mxu0 %v889_v0 }
  0x77   :  { %680 = vmatprep.subr.bf16.mxu1 %v889_v0 }
  0x79   :  { %700 = vmatpush3.bf16.msra.mxu0 %v699_v50 }
  0x7a   :  { %682 = vmatpush3.bf16.msra.mxu1 %v681_v32  ;;  %701 = vmatprep.subr.bf16.mxu0 %v889_v0  ;;  %v480_v32 = vld [vmem:[%s1063_s5 + $0x3] ss:$0 sm:$0xff] }
  0x7b   :  { %707 = vmatprep.subr.bf16.mxu1 %v889_v0 }
  0x7d   :  { %703 = vmatpush3.bf16.msra.mxu0 %v702_v53 }
  0x7e   :  { %704 = vmatprep.subr.bf16.mxu0 %v889_v0 }
  0x81   :  { %706 = vmatpush3.bf16.msra.mxu0 %v705_v61 }
 0x137   :  { %v172_v55 = vpop.f32.mrb[0].mxu0 }
 0x138   :  { %v173_v56 = vadd.f32 %v476_v54, %v172_v55  ;;  %v547_v57 = vpop.f32.mrb[1].mxu0 }
 0x13a   :  { %v176_v58 = vmax.f32 %v173_v56, 0.0 }
 0x13c   :  { %581 = vmatmul.mubr.f32.vlgmr.msra.gmra.mrb[0].mxu1 %v176_v58 }
 0x13d   :  { %650 = vmatprep.mubr.msk.f32.mxu1 %vm890_vm0, %v891_v1  ;;  %709 = vmatpush3.bf16.msra.mxu1 %v708_v3  ;;  %v371_v1 = vld [vmem:[#allocation10 + $0x30] sm:$0xff] }
 0x13e   :  { %710 = vmatprep.subr.bf16.mxu1 %v889_v0  ;;  %v717_v10 = vpack.c.bf16 %v372_v9, %v371_v1 }
 0x141   :  { %712 = vmatpush3.bf16.msra.mxu1 %v711_v5 }
 0x142   :  { %713 = vmatprep.subr.bf16.mxu1 %v889_v0 }
 0x145   :  { %715 = vmatpush3.bf16.msra.mxu1 %v714_v8 }
 0x146   :  { %716 = vmatprep.subr.bf16.mxu1 %v889_v0 }
 0x149   :  { %718 = vmatpush3.bf16.msra.mxu1 %v717_v10 }
 0x14a   :  { %719 = vmatprep.subr.bf16.mxu1 %v889_v0 }
 0x14d   :  { %721 = vmatpush3.bf16.msra.mxu1 %v720_v13 }
 0x14e   :  { %722 = vmatprep.subr.bf16.mxu1 %v889_v0 }
 0x151   :  { %724 = vmatpush3.bf16.msra.mxu1 %v723_v16 }
 0x152   :  { %725 = vmatprep.subr.bf16.mxu1 %v889_v0 }
 0x155   :  { %727 = vmatpush3.bf16.msra.mxu1 %v726_v19 }
 0x156   :  { %728 = vmatprep.subr.bf16.mxu1 %v889_v0 }
 0x159   :  { %730 = vmatpush3.bf16.msra.mxu1 %v729_v27 }
 0x20f   :  { %v266_v21 = vpop.f32.mrb[0].mxu1 }
 0x210   :  { %v267_v22 = vadd.f32 %v478_v20, %v266_v21  ;;  %v582_v23 = vpop.f32.mrb[1].mxu1 }
 0x212   :  { %v270_v24 = vmax.f32 %v267_v22, 0.0 }
 0x214   :  { %616 = vmatmul.mubr.f32.vlgmr.msra.gmra.mrb[2].mxu0 %v270_v24 }
 0x2e7   :  { %v360_v29 = vpop.f32.mrb[2].mxu0 }
 0x2e8   :  { %v361_v30 = vadd.f32 %v479_v28, %v360_v29  ;;  %v617_v0 = vpop.f32.mrb[3].mxu0 }
 0x2ea   :  { %v364_v31 = vmax.f32 %v361_v30, 0.0 }
 0x2ec   :  { %651 = vmatmul.mubr.f32.vlgmr.msra.gmra.mrb[2].mxu1 %v364_v31 }
 0x3bf   :  { %v454_v33 = vpop.f32.mrb[2].mxu1 }
 0x3c0   :  { %v455_v34 = vadd.f32 %v480_v32, %v454_v33  ;;  %v652_v35 = vpop.f32.mrb[3].mxu1 }
 0x3c2   :  { %458 = vst [vmem:[#allocation11] sm:$0xff] %v455_v34 }
 0x3c3   :  { %863 = shalt.err (!%p860_p2)
}
 0x3c4   :  { %s864_s20 = scalar_lea.hbm %s1064_s6, 128 }
 0x3c5   :  { %p865_p3 = scmp.ne.s32.totalorder %s1064_s6, %s864_s20  ;;  %p868_p4 = scmp.lt.u32.totalorder %s864_s20, %s1064_s6 }
 0x3c7   :  { %p870_p5 = pnand %p868_p4, %p865_p3 }
 0x3c9   :  { %873 = shalt.err (!%p870_p5)
}
 0x3ca   :  { %468 = dma.vmem_to_hbm [thread:$0]  %s466_s16, 128, %s1064_s6, [#allocation4]  }
 0x3cb   :  { %880 = dma.done.wait [#allocation4], 128  }
 0x3cc   :  { %881 = vsyncadd [#allocation4], 4294967168 }
 0x3cd   :  { %472 = vsyncpa [#allocation3], 1 }
 0x3ce   :  { %473 = vsyncpa [#allocation6], 1 }
 0x3cf   :  { %474 = vsyncpa [#allocation9], 1 }
 0x3d0   :  { %475 = vsyncpa [#allocation4], 1 }

</bundles_post_ra>
